<compile_context>
chip_gen: v6e
topology: v6e:2x2x1
jax: 0.10.0
libtpu: 0.0.40
codegen_flags: <defaults>
</compile_context>

<pallas_src>
import jax
import jax.numpy as jnp
from jax.experimental import pallas as pl
from jax.experimental.pallas import tpu as pltpu

EPS = 1e-5
OUT_PAD = 128   # lane-dense padding for the fc3 output / w3 columns


def classifier_kernel(x_ref,
                      w1_ref, b1_ref, g1_ref, beta1_ref,
                      w2_ref, b2_ref, g2_ref, beta2_ref,
                      w3_ref, b3_ref,
                      out_ref):
    # Whole problem resident in VMEM; single grid point.
    B = x_ref.shape[0]
    inv_b = 1.0 / B

    def bn_relu(h, g, beta):
        # Single-pass batch stats (biased variance, PyTorch training-mode BN),
        # folded into one scale/shift pass over the (B, N) tile.
        s = jnp.sum(h, axis=0, keepdims=True)
        ss = jnp.sum(h * h, axis=0, keepdims=True)
        mu = s * inv_b
        var = jnp.maximum(ss * inv_b - mu * mu, 0.0)
        scale = g * jax.lax.rsqrt(var + EPS)
        shift = beta - mu * scale
        return jnp.maximum(h * scale + shift, 0.0)

    x = x_ref[...]                                   # bf16, (B, latent_pad)

    # ----- fc1 (bf16 MXU, f32 accumulate) + bn1 + relu -----
    h = jnp.dot(x, w1_ref[...], preferred_element_type=jnp.float32) + b1_ref[...]
    h = bn_relu(h, g1_ref[...], beta1_ref[...])

    # ----- fc2 + bn2 + relu -----
    h = jnp.dot(h.astype(jnp.bfloat16), w2_ref[...],
                preferred_element_type=jnp.float32) + b2_ref[...]
    h = bn_relu(h, g2_ref[...], beta2_ref[...])

    # ----- fc3 (output padded to 128 lanes; wrapper slices to num_classes) -----
    out = jnp.dot(h.astype(jnp.bfloat16), w3_ref[...],
                  preferred_element_type=jnp.float32) + b3_ref[...]
    out_ref[...] = out.astype(out_ref.dtype)


def prepare_params(params, latent_pad):
    """Pad + cast weights for the kernel: w1 rows -> latent_pad, w3/b3 cols ->
    OUT_PAD, weights to bf16.  Biases / BN affine params stay f32 (tiny)."""
    latent_dim = params["w1"].shape[0]
    num_classes = params["w3"].shape[1]
    w1 = jnp.pad(params["w1"], ((0, latent_pad - latent_dim), (0, 0)))
    w3 = jnp.pad(params["w3"], ((0, 0), (0, OUT_PAD - num_classes)))
    b3 = jnp.pad(params["b3"], ((0, 0), (0, OUT_PAD - num_classes)))
    return {
        "w1": w1.astype(jnp.bfloat16),
        "w2": params["w2"].astype(jnp.bfloat16),
        "w3": w3.astype(jnp.bfloat16),
        "b1": params["b1"], "g1": params["g1"], "beta1": params["beta1"],
        "b2": params["b2"], "g2": params["g2"], "beta2": params["beta2"],
        "b3": b3,
    }


def classifier_forward(x, params):
    """x: (B, latent_dim) float32.  params: dict of f32 weights (see init_params)."""
    B, latent_dim = x.shape
    num_classes = params["w3"].shape[1]
    latent_pad = max(128, ((latent_dim + 127) // 128) * 128)

    p = prepare_params(params, latent_pad)
    xp = jnp.pad(x, ((0, 0), (0, latent_pad - latent_dim))).astype(jnp.bfloat16)

    args = (
        xp,
        p["w1"], p["b1"], p["g1"], p["beta1"],
        p["w2"], p["b2"], p["g2"], p["beta2"],
        p["w3"], p["b3"],
    )
    vmem_spec = pl.BlockSpec(memory_space=pltpu.MemorySpace.VMEM)

    flops = 2 * B * (latent_pad * 256 + 256 * 128 + 128 * OUT_PAD)
    bytes_accessed = (int(xp.size) * 2
                      + sum(int(v.size) * v.dtype.itemsize for v in args[1:])
                      + B * OUT_PAD * 4)

    out_padded = pl.pallas_call(
        classifier_kernel,
        out_shape=jax.ShapeDtypeStruct((B, OUT_PAD), jnp.float32),
        in_specs=[vmem_spec] * len(args),
        out_specs=vmem_spec,
        cost_estimate=pl.CostEstimate(flops=flops, transcendentals=0,
                                      bytes_accessed=bytes_accessed),
    )(*args)
    return out_padded[:, :num_classes]


def init_params(key, latent_dim, num_classes):
    """PyTorch-Linear-style init: U(-1/sqrt(fan_in), 1/sqrt(fan_in)).
    BatchNorm affine params: gamma=1, beta=0.  Biases/BN params kept 2D (1, N)."""
    def linear(key, fan_in, fan_out):
        kw, kb = jax.random.split(key)
        bound = 1.0 / jnp.sqrt(fan_in)
        w = jax.random.uniform(kw, (fan_in, fan_out), jnp.float32, -bound, bound)
        b = jax.random.uniform(kb, (1, fan_out), jnp.float32, -bound, bound)
        return w, b

    k1, k2, k3 = jax.random.split(key, 3)
    w1, b1 = linear(k1, latent_dim, 256)
    w2, b2 = linear(k2, 256, 128)
    w3, b3 = linear(k3, 128, num_classes)
    return {
        "w1": w1, "b1": b1,
        "g1": jnp.ones((1, 256), jnp.float32), "beta1": jnp.zeros((1, 256), jnp.float32),
        "w2": w2, "b2": b2,
        "g2": jnp.ones((1, 128), jnp.float32), "beta2": jnp.zeros((1, 128), jnp.float32),
        "w3": w3, "b3": b3,
    }


def reference_forward(x, params):
    """Pure-JAX reference mirroring the kernel math (bf16 operands at the dots,
    f32 accumulation, training-mode BatchNorm with biased batch variance)."""
    B, latent_dim = x.shape
    latent_pad = max(128, ((latent_dim + 127) // 128) * 128)
    p = prepare_params(params, latent_pad)
    num_classes = params["w3"].shape[1]
    xb = jnp.pad(x, ((0, 0), (0, latent_pad - latent_dim))).astype(jnp.bfloat16)

    def bn(h, g, beta):
        mu = h.sum(0, keepdims=True) / B
        var = jnp.maximum((h * h).sum(0, keepdims=True) / B - mu * mu, 0.0)
        return (h - mu) * jax.lax.rsqrt(var + EPS) * g + beta

    h = jnp.dot(xb, p["w1"], preferred_element_type=jnp.float32) + p["b1"]
    h = jnp.maximum(bn(h, p["g1"], p["beta1"]), 0.0)
    h = jnp.dot(h.astype(jnp.bfloat16), p["w2"], preferred_element_type=jnp.float32) + p["b2"]
    h = jnp.maximum(bn(h, p["g2"], p["beta2"]), 0.0)
    out = jnp.dot(h.astype(jnp.bfloat16), p["w3"], preferred_element_type=jnp.float32) + p["b3"]
    return out[:, :num_classes]


if __name__ == "__main__":
    latent_dim = 32
    num_classes = 10
    batch = 8

    key = jax.random.PRNGKey(0)
    kx, kp = jax.random.split(key)
    x = jax.random.normal(kx, (batch, latent_dim), jnp.float32)
    params = init_params(kp, latent_dim, num_classes)

    out = classifier_forward(x, params)
    out = jax.block_until_ready(out)

    ref = reference_forward(x, params)
    assert out.shape == (batch, num_classes)
    assert jnp.allclose(out, ref, atol=1e-3, rtol=1e-3)

    print("KERNEL_OK")
</pallas_src>

<mosaic_0001>
module attributes {stable_mosaic.version = 11 : i64} {
  func.func @classifier_kernel(%arg0: memref<8x128xbf16, #tpu.memory_space<vmem>>, %arg1: memref<128x256xbf16, #tpu.memory_space<vmem>>, %arg2: memref<1x256xf32, #tpu.memory_space<vmem>>, %arg3: memref<1x256xf32, #tpu.memory_space<vmem>>, %arg4: memref<1x256xf32, #tpu.memory_space<vmem>>, %arg5: memref<256x128xbf16, #tpu.memory_space<vmem>>, %arg6: memref<1x128xf32, #tpu.memory_space<vmem>>, %arg7: memref<1x128xf32, #tpu.memory_space<vmem>>, %arg8: memref<1x128xf32, #tpu.memory_space<vmem>>, %arg9: memref<128x128xbf16, #tpu.memory_space<vmem>>, %arg10: memref<1x128xf32, #tpu.memory_space<vmem>>, %arg11: memref<8x128xf32, #tpu.memory_space<vmem>>) attributes {dimension_semantics = [], scalar_prefetch = 0 : i64, scratch_operands = 0 : i64, tpu.core_type = #tpu.core_type<tc>} {
    %c0 = arith.constant 0 : index
    %c0_0 = arith.constant 0 : index
    %0 = vector.load %arg0[%c0, %c0_0] : memref<8x128xbf16, #tpu.memory_space<vmem>>, vector<8x128xbf16>
    %c0_1 = arith.constant 0 : index
    %c0_2 = arith.constant 0 : index
    %1 = vector.load %arg1[%c0_1, %c0_2] : memref<128x256xbf16, #tpu.memory_space<vmem>>, vector<128x256xbf16>
    %cst = arith.constant dense<0.000000e+00> : vector<8x256xf32>
    %2 = tpu.matmul %0, %1, %cst {dimension_numbers = #tpu.dot_dimension_numbers<[1], [0], [0], [1], [0, 0, 1, 1], [], []>} : vector<8x128xbf16>, vector<128x256xbf16>, vector<8x256xf32> -> vector<8x256xf32>
    %c0_3 = arith.constant 0 : index
    %c0_4 = arith.constant 0 : index
    %3 = vector.load %arg2[%c0_3, %c0_4] : memref<1x256xf32, #tpu.memory_space<vmem>>, vector<1x256xf32>
    %4 = vector.broadcast %3 : vector<1x256xf32> to vector<8x256xf32>
    %5 = arith.addf %2, %4 : vector<8x256xf32>
    %c0_5 = arith.constant 0 : index
    %c0_6 = arith.constant 0 : index
    %6 = vector.load %arg3[%c0_5, %c0_6] : memref<1x256xf32, #tpu.memory_space<vmem>>, vector<1x256xf32>
    %c0_7 = arith.constant 0 : index
    %c0_8 = arith.constant 0 : index
    %7 = vector.load %arg4[%c0_7, %c0_8] : memref<1x256xf32, #tpu.memory_space<vmem>>, vector<1x256xf32>
    %cst_9 = arith.constant dense<0.000000e+00> : vector<256xf32>
    %8 = vector.multi_reduction <add>, %5, %cst_9 [0] : vector<8x256xf32> to vector<256xf32>
    %9 = vector.shape_cast %8 : vector<256xf32> to vector<1x256xf32>
    %10 = arith.mulf %5, %5 : vector<8x256xf32>
    %cst_10 = arith.constant dense<0.000000e+00> : vector<256xf32>
    %11 = vector.multi_reduction <add>, %10, %cst_10 [0] : vector<8x256xf32> to vector<256xf32>
    %12 = vector.shape_cast %11 : vector<256xf32> to vector<1x256xf32>
    %cst_11 = arith.constant 1.250000e-01 : f32
    %13 = vector.broadcast %cst_11 : f32 to vector<1x256xf32>
    %14 = arith.mulf %9, %13 : vector<1x256xf32>
    %cst_12 = arith.constant 1.250000e-01 : f32
    %15 = vector.broadcast %cst_12 : f32 to vector<1x256xf32>
    %16 = arith.mulf %12, %15 : vector<1x256xf32>
    %17 = arith.mulf %14, %14 : vector<1x256xf32>
    %18 = arith.subf %16, %17 : vector<1x256xf32>
    %cst_13 = arith.constant 0.000000e+00 : f32
    %19 = vector.broadcast %cst_13 : f32 to vector<1x256xf32>
    %20 = arith.maximumf %18, %19 : vector<1x256xf32>
    %cst_14 = arith.constant 9.99999974E-6 : f32
    %21 = vector.broadcast %cst_14 : f32 to vector<1x256xf32>
    %22 = arith.addf %20, %21 : vector<1x256xf32>
    %23 = math.rsqrt %22 : vector<1x256xf32>
    %24 = arith.mulf %6, %23 : vector<1x256xf32>
    %25 = arith.mulf %14, %24 : vector<1x256xf32>
    %26 = arith.subf %7, %25 : vector<1x256xf32>
    %27 = vector.broadcast %24 : vector<1x256xf32> to vector<8x256xf32>
    %28 = arith.mulf %5, %27 : vector<8x256xf32>
    %29 = vector.broadcast %26 : vector<1x256xf32> to vector<8x256xf32>
    %30 = arith.addf %28, %29 : vector<8x256xf32>
    %cst_15 = arith.constant 0.000000e+00 : f32
    %31 = vector.broadcast %cst_15 : f32 to vector<8x256xf32>
    %32 = arith.maximumf %30, %31 : vector<8x256xf32>
    %33 = arith.truncf %32 : vector<8x256xf32> to vector<8x256xbf16>
    %c0_16 = arith.constant 0 : index
    %c0_17 = arith.constant 0 : index
    %34 = vector.load %arg5[%c0_16, %c0_17] : memref<256x128xbf16, #tpu.memory_space<vmem>>, vector<256x128xbf16>
    %cst_18 = arith.constant dense<0.000000e+00> : vector<8x128xf32>
    %35 = tpu.matmul %33, %34, %cst_18 {dimension_numbers = #tpu.dot_dimension_numbers<[1], [0], [0], [1], [0, 0, 1, 1], [], []>} : vector<8x256xbf16>, vector<256x128xbf16>, vector<8x128xf32> -> vector<8x128xf32>
    %c0_19 = arith.constant 0 : index
    %c0_20 = arith.constant 0 : index
    %36 = vector.load %arg6[%c0_19, %c0_20] : memref<1x128xf32, #tpu.memory_space<vmem>>, vector<1x128xf32>
    %37 = vector.broadcast %36 : vector<1x128xf32> to vector<8x128xf32>
    %38 = arith.addf %35, %37 : vector<8x128xf32>
    %c0_21 = arith.constant 0 : index
    %c0_22 = arith.constant 0 : index
    %39 = vector.load %arg7[%c0_21, %c0_22] : memref<1x128xf32, #tpu.memory_space<vmem>>, vector<1x128xf32>
    %c0_23 = arith.constant 0 : index
    %c0_24 = arith.constant 0 : index
    %40 = vector.load %arg8[%c0_23, %c0_24] : memref<1x128xf32, #tpu.memory_space<vmem>>, vector<1x128xf32>
    %cst_25 = arith.constant dense<0.000000e+00> : vector<128xf32>
    %41 = vector.multi_reduction <add>, %38, %cst_25 [0] : vector<8x128xf32> to vector<128xf32>
    %42 = vector.shape_cast %41 : vector<128xf32> to vector<1x128xf32>
    %43 = arith.mulf %38, %38 : vector<8x128xf32>
    %cst_26 = arith.constant dense<0.000000e+00> : vector<128xf32>
    %44 = vector.multi_reduction <add>, %43, %cst_26 [0] : vector<8x128xf32> to vector<128xf32>
    %45 = vector.shape_cast %44 : vector<128xf32> to vector<1x128xf32>
    %cst_27 = arith.constant 1.250000e-01 : f32
    %46 = vector.broadcast %cst_27 : f32 to vector<1x128xf32>
    %47 = arith.mulf %42, %46 : vector<1x128xf32>
    %cst_28 = arith.constant 1.250000e-01 : f32
    %48 = vector.broadcast %cst_28 : f32 to vector<1x128xf32>
    %49 = arith.mulf %45, %48 : vector<1x128xf32>
    %50 = arith.mulf %47, %47 : vector<1x128xf32>
    %51 = arith.subf %49, %50 : vector<1x128xf32>
    %cst_29 = arith.constant 0.000000e+00 : f32
    %52 = vector.broadcast %cst_29 : f32 to vector<1x128xf32>
    %53 = arith.maximumf %51, %52 : vector<1x128xf32>
    %cst_30 = arith.constant 9.99999974E-6 : f32
    %54 = vector.broadcast %cst_30 : f32 to vector<1x128xf32>
    %55 = arith.addf %53, %54 : vector<1x128xf32>
    %56 = math.rsqrt %55 : vector<1x128xf32>
    %57 = arith.mulf %39, %56 : vector<1x128xf32>
    %58 = arith.mulf %47, %57 : vector<1x128xf32>
    %59 = arith.subf %40, %58 : vector<1x128xf32>
    %60 = vector.broadcast %57 : vector<1x128xf32> to vector<8x128xf32>
    %61 = arith.mulf %38, %60 : vector<8x128xf32>
    %62 = vector.broadcast %59 : vector<1x128xf32> to vector<8x128xf32>
    %63 = arith.addf %61, %62 : vector<8x128xf32>
    %cst_31 = arith.constant 0.000000e+00 : f32
    %64 = vector.broadcast %cst_31 : f32 to vector<8x128xf32>
    %65 = arith.maximumf %63, %64 : vector<8x128xf32>
    %66 = arith.truncf %65 : vector<8x128xf32> to vector<8x128xbf16>
    %c0_32 = arith.constant 0 : index
    %c0_33 = arith.constant 0 : index
    %67 = vector.load %arg9[%c0_32, %c0_33] : memref<128x128xbf16, #tpu.memory_space<vmem>>, vector<128x128xbf16>
    %cst_34 = arith.constant dense<0.000000e+00> : vector<8x128xf32>
    %68 = tpu.matmul %66, %67, %cst_34 {dimension_numbers = #tpu.dot_dimension_numbers<[1], [0], [0], [1], [0, 0, 1, 1], [], []>} : vector<8x128xbf16>, vector<128x128xbf16>, vector<8x128xf32> -> vector<8x128xf32>
    %c0_35 = arith.constant 0 : index
    %c0_36 = arith.constant 0 : index
    %69 = vector.load %arg10[%c0_35, %c0_36] : memref<1x128xf32, #tpu.memory_space<vmem>>, vector<1x128xf32>
    %70 = vector.broadcast %69 : vector<1x128xf32> to vector<8x128xf32>
    %71 = arith.addf %68, %70 : vector<8x128xf32>
    %c0_37 = arith.constant 0 : index
    %c0_38 = arith.constant 0 : index
    %72 = vector.load %arg11[%c0_37, %c0_38] : memref<8x128xf32, #tpu.memory_space<vmem>>, vector<8x128xf32>
    tpu.vector_store %arg11[%c0_37, %c0_38], %71 {strides = array<i32>} : memref<8x128xf32, #tpu.memory_space<vmem>>, vector<8x128xf32>,
    return
  }
}

</mosaic_0001>

<bundles_post_ra>
// kernel: tpu_custom_call.1
= control target key start
LH: loop header
LB: loop body
LE: loop exit
PB: predicated region body
PF: predicated region fallthrough
CT: control target
= control target key end

     0   :  { %16 = vsyncpa [#allocation3], 0  ;;  %s1096_s0 = inlined_call_operand.hbm [shape: bf16[8,128], index: 0, kind: input, shape index: {}]   ;;  %s1097_s1 = inlined_call_operand.hbm [shape: bf16[128,256], index: 1, kind: input, shape index: {}]   ;;  %s1098_s2 = inlined_call_operand.vmem [shape: f32[1,256], index: 2, kind: input, shape index: {}]   ;;  %s1099_s3 = inlined_call_operand.vmem [shape: f32[1,256], index: 3, kind: input, shape index: {}]   ;;  %s1100_s4 = inlined_call_operand.vmem [shape: f32[1,256], index: 4, kind: input, shape index: {}]   ;;  %s1101_s5 = inlined_call_operand.hbm [shape: bf16[256,128], index: 5, kind: input, shape index: {}]   ;;  %s1102_s6 = inlined_call_operand.vmem [shape: f32[1,128], index: 6, kind: input, shape index: {}]   ;;  %s1103_s7 = inlined_call_operand.vmem [shape: f32[1,128], index: 7, kind: input, shape index: {}]   ;;  %s1104_s8 = inlined_call_operand.vmem [shape: f32[1,128], index: 8, kind: input, shape index: {}]   ;;  %s1105_s9 = inlined_call_operand.hbm [shape: bf16[128,128], index: 9, kind: input, shape index: {}]   ;;  %s1106_s10 = inlined_call_operand.vmem [shape: f32[1,128], index: 10, kind: input, shape index: {}]   ;;  %s1107_s11 = inlined_call_operand.hbm [shape: f32[8,128], index: 11, kind: output, shape index: {}]  }
   0x1   :  { %17 = vsyncpa [#allocation6], 0 }
   0x2   :  { %18 = vsyncpa [#allocation9], 0 }
   0x3   :  { %19 = vsyncpa [#allocation4], 0  ;;  %s968_s17 = smov [#allocation5]  }
   0x4   :  { %s35_s18 = sshll.u32 %s968_s17, 4  ;;  %s36_s18 = int_to_ptr.vmem [resolvable:$true] %s35_s18 }
   0x5   :  { %s868_s19 = scalar_lea.vmem %s36_s18, 2048  ;;  %p873_p1 = scmp.lt.s32.totalorder %s36_s18, %s36_s18 }
   0x6   :  { %p869_p0 = scmp.ne.s32.totalorder %s36_s18, %s868_s19  ;;  %p874_p2 = scmp.lt.s32.totalorder %s868_s19, %s868_s19 }
   0x8   :  { %p875_p3 = por %p874_p2, %p873_p1 }
   0xa   :  { %p876_p4 = pnand %p875_p3, %p869_p0 }
   0xc   :  { %879 = shalt.err (!%p876_p4)
}
   0xd   :  { %s969_s20 = smov 128   ;;  %s970_s21 = smov 8  }
   0xe   :  { %41 = dma.hbm_to_vmem [thread:$0]  %s1097_s1, 2048, %s36_s18, [#allocation6], %s969_s20, %s969_s20, %s970_s21  }
   0xf   :  { %s971_s24 = smov [#allocation2]   ;;  %s972_s26 = smov [#allocation7]  }
  0x10   :  { %s26_s25 = sshll.u32 %s971_s24, 4  ;;  %s53_s27 = sshll.u32 %s972_s26, 4  ;;  %s27_s25 = int_to_ptr.vmem [resolvable:$true] %s26_s25  ;;  %s54_s27 = int_to_ptr.vmem [resolvable:$true] %s53_s27 }
  0x11   :  { %s888_s28 = scalar_lea.vmem %s27_s25, 64  ;;  %p893_p6 = scmp.lt.s32.totalorder %s27_s25, %s27_s25 }
  0x12   :  { %p889_p5 = scmp.ne.s32.totalorder %s27_s25, %s888_s28  ;;  %p894_p7 = scmp.lt.s32.totalorder %s888_s28, %s888_s28 }
  0x14   :  { %p895_p8 = por %p894_p7, %p893_p6 }
  0x16   :  { %p896_p9 = pnand %p895_p8, %p889_p5 }
  0x18   :  { %899 = shalt.err (!%p896_p9)
}
  0x19   :  { %29 = dma.hbm_to_vmem [thread:$0]  %s1096_s0, 64, %s27_s25, [#allocation3]  }
  0x1a   :  { %s908_s12 = scalar_lea.vmem %s54_s27, 2048  ;;  %p913_p11 = scmp.lt.s32.totalorder %s54_s27, %s54_s27 }
  0x1b   :  { %p909_p10 = scmp.ne.s32.totalorder %s54_s27, %s908_s12  ;;  %p914_p12 = scmp.lt.s32.totalorder %s908_s12, %s908_s12 }
  0x1d   :  { %p915_p13 = por %p914_p12, %p913_p11 }
  0x1f   :  { %p916_p0 = pnand %p915_p13, %p909_p10 }
  0x21   :  { %919 = shalt.err (!%p916_p0)
}
  0x22   :  { %s973_s1 = smov 64   ;;  %s974_s13 = smov 4  }
  0x23   :  { %59 = dma.hbm_to_vmem [thread:$0]  %s1101_s5, 2048, %s54_s27, [#allocation6], %s973_s1, %s973_s1, %s974_s13  }
  0x24   :  { %s975_s16 = smov [#allocation8]  }
  0x25   :  { %s71_s17 = sshll.u32 %s975_s16, 4  ;;  %s72_s17 = int_to_ptr.vmem [resolvable:$true] %s71_s17 }
  0x26   :  { %s928_s18 = scalar_lea.vmem %s72_s17, 1024  ;;  %p933_p2 = scmp.lt.s32.totalorder %s72_s17, %s72_s17 }
  0x27   :  { %p929_p1 = scmp.ne.s32.totalorder %s72_s17, %s928_s18  ;;  %p934_p3 = scmp.lt.s32.totalorder %s928_s18, %s928_s18 }
  0x29   :  { %p935_p4 = por %p934_p3, %p933_p2 }
  0x2b   :  { %p936_p5 = pnand %p935_p4, %p929_p1 }
  0x2d   :  { %939 = shalt.err (!%p936_p5)
}
  0x2e   :  { %77 = dma.hbm_to_vmem [thread:$0]  %s1105_s9, 1024, %s72_s17, [#allocation9], %s973_s1, %s973_s1, %s974_s13  }
  0x2f   :  { %960 = dma.done.wait [#allocation3], 64  }
  0x30   :  { %961 = vsyncadd [#allocation3], 4294967232 }
  0x31   :  { %962 = dma.done.wait [#allocation6], 4096  }
  0x32   :  { %963 = vsyncadd [#allocation6], 4294963200 }
  0x33   :  { %964 = dma.done.wait [#allocation9], 1024  }
  0x34   :  { %965 = vsyncadd [#allocation9], 4294966272  ;;  %v976_v0 = vmov 0   ;;  %v806_v1 = vld [vmem:[#allocation5 + $0x74] ss:$8 sps:$4 sm:$0xff]   ;;  %v834_v22 = vld [vmem:[#allocation7 + $0x68] sm:$0xff]   ;;  %v112_v34 = vlaneseq }
  0x35   :  { %234 = vmatprep.mubr.bf16.mxu0 %v976_v0  ;;  %v808_v2 = vld [vmem:[#allocation5 + $0x70] ss:$8 sps:$4 sm:$0xff]   ;;  %202 = vmatprep.subr.bf16.mxu0 %v806_v1  ;;  %v809_v3 = vld [vmem:[#allocation5 + $0x64] ss:$8 sps:$4 sm:$0xff]   ;;  %v811_v4 = vld [vmem:[#allocation5 + $0x60] ss:$8 sps:$4 sm:$0xff]  }
  0x36   :  { %203 = vmatpush1.bf16.msra.mxu0 %v808_v2  ;;  %v812_v5 = vld [vmem:[#allocation5 + $0x54] ss:$8 sps:$4 sm:$0xff]   ;;  %v814_v6 = vld [vmem:[#allocation5 + $0x50] ss:$8 sps:$4 sm:$0xff]   ;;  %v815_v7 = vld [vmem:[#allocation5 + $0x44] ss:$8 sps:$4 sm:$0xff]  }
  0x37   :  { %204 = vmatprep.subr.bf16.mxu0 %v809_v3  ;;  %v817_v8 = vld [vmem:[#allocation5 + $0x40] ss:$8 sps:$4 sm:$0xff]   ;;  %v818_v9 = vld [vmem:[#allocation5 + $0x34] ss:$8 sps:$4 sm:$0xff]   ;;  %v820_v10 = vld [vmem:[#allocation5 + $0x30] ss:$8 sps:$4 sm:$0xff]  }
  0x38   :  { %v821_v11 = vld [vmem:[#allocation5 + $0x24] ss:$8 sps:$4 sm:$0xff]   ;;  %v823_v12 = vld [vmem:[#allocation5 + $0x20] ss:$8 sps:$4 sm:$0xff]   ;;  %v824_v13 = vld [vmem:[#allocation5 + $0x14] ss:$8 sps:$4 sm:$0xff]  }
  0x39   :  { %v826_v14 = vld [vmem:[#allocation5 + $0x10] ss:$8 sps:$4 sm:$0xff]   ;;  %v827_v15 = vld [vmem:[#allocation5 + $0x4] ss:$8 sps:$4 sm:$0xff]   ;;  %v829_v16 = vld [vmem:[#allocation5] ss:$8 sps:$4 sm:$0xff]  }
  0x3a   :  { %205 = vmatpush1.bf16.msra.mxu0 %v811_v4  ;;  %v93_v17 = vld [vmem:[#allocation2] sm:$0xf]  ;;  %v832_v20 = vld [vmem:[#allocation7 + $0x70] sm:$0xff]   ;;  %v835_v23 = vld [vmem:[#allocation7 + $0x28] sm:$0xff]   ;;  %v113_v35 = vshrl.u32 %v112_v34, 7  ;;  %vm979_vm0 = vmmov 0  }
  0x3b   :  { %206 = vmatprep.subr.bf16.mxu0 %v812_v5  ;;  %v830_v18 = vld [vmem:[#allocation7 + $0x78] sm:$0xff]   ;;  %v833_v21 = vld [vmem:[#allocation7 + $0x30] sm:$0xff]   ;;  %v836_v24 = vld [vmem:[#allocation7 + $0x60] sm:$0xff]  }
  0x3c   :  { %v831_v19 = vld [vmem:[#allocation7 + $0x38] sm:$0xff]   ;;  %742 = vmatprep.subr.bf16.mxu1 %v830_v18  ;;  %v837_v25 = vld [vmem:[#allocation7 + $0x20] sm:$0xff]   ;;  %v840_v28 = vld [vmem:[#allocation7 + $0x50] sm:$0xff]   ;;  %v1053_v36 = vsub.s32 0, %v113_v35  ;;  %v1058_v38 = vsub.s32 1, %v113_v35 }
  0x3d   :  { %743 = vmatpush3.bf16.msra.mxu1 %v831_v19  ;;  %v838_v26 = vld [vmem:[#allocation7 + $0x58] sm:$0xff]   ;;  %v841_v29 = vld [vmem:[#allocation7 + $0x10] sm:$0xff]   ;;  %v842_v30 = vld [vmem:[#allocation7 + $0x48] sm:$0xff]  }
  0x3e   :  { %207 = vmatpush1.bf16.msra.mxu0 %v814_v6  ;;  %744 = vmatprep.subr.bf16.mxu1 %v832_v20  ;;  %v839_v27 = vld [vmem:[#allocation7 + $0x18] sm:$0xff]   ;;  %v843_v31 = vld [vmem:[#allocation7 + $0x8] sm:$0xff]   ;;  %v844_v32 = vld [vmem:[#allocation7 + $0x40] sm:$0xff]  }
  0x3f   :  { %208 = vmatprep.subr.bf16.mxu0 %v815_v7  ;;  %v845_v33 = vld [vmem:[#allocation7] sm:$0xff]   ;;  %v110_v37 = vld [vmem:[%s1098_s2] sm:$0x3] }
  0x40   :  { %v115_v39 = vrot.slane %v110_v37, %v1053_v36  ;;  %v119_v40 = vrot.slane %v110_v37, %v1058_v38 }
  0x41   :  { %745 = vmatpush3.bf16.msra.mxu1 %v833_v21  ;;  %v977_v21 = vmov 1966171168  }
  0x42   :  { %209 = vmatpush1.bf16.msra.mxu0 %v817_v8  ;;  %746 = vmatprep.subr.bf16.mxu1 %v834_v22  ;;  %v289_v22 = vunpack.c.l.s4 %v977_v21 }
  0x43   :  { %210 = vmatprep.subr.bf16.mxu0 %v818_v9 }
  0x45   :  { %747 = vmatpush3.bf16.msra.mxu1 %v835_v23  ;;  %v290_v23 = vunpack.c.0.s8 %v289_v22 }
  0x46   :  { %211 = vmatpush1.bf16.msra.mxu0 %v820_v10  ;;  %748 = vmatprep.subr.bf16.mxu1 %v836_v24 }
  0x47   :  { %212 = vmatprep.subr.bf16.mxu0 %v821_v11 }
  0x49   :  { %749 = vmatpush3.bf16.msra.mxu1 %v837_v25  ;;  %v293_v25 = vsub.s32 %v290_v23, %v113_v35  ;;  %v244_v35 = vld [vmem:[%s1100_s4] sm:$0x3] }
  0x4a   :  { %213 = vmatpush1.bf16.msra.mxu0 %v823_v12  ;;  %750 = vmatprep.subr.bf16.mxu1 %v838_v26  ;;  %v530_v23 = vld [vmem:[%s1103_s7] sm:$0x1]  ;;  %s980_s7 = smov [#allocation10]  }
  0x4b   :  { %214 = vmatprep.subr.bf16.mxu0 %v824_v13  ;;  %s689_s28 = sshll.u32 %s980_s7, 4  ;;  %s690_s28 = int_to_ptr.vmem [resolvable:$true] %s689_s28 }
  0x4c   :  { %p945_p7 = scmp.lt.s32.totalorder %s690_s28, %s690_s28 }
  0x4d   :  { %751 = vmatpush3.bf16.msra.mxu1 %v839_v27 }
  0x4e   :  { %215 = vmatpush1.bf16.msra.mxu0 %v826_v14  ;;  %752 = vmatprep.subr.bf16.mxu1 %v840_v28 }
  0x4f   :  { %216 = vmatprep.subr.bf16.mxu0 %v827_v15 }
  0x51   :  { %753 = vmatpush3.bf16.msra.mxu1 %v841_v29  ;;  %v243_v29 = vld [vmem:[%s1099_s3] sm:$0x3] }
  0x52   :  { %217 = vmatpush1.bf16.msra.mxu0 %v829_v16  ;;  %754 = vmatprep.subr.bf16.mxu1 %v842_v30 }
  0x55   :  { %235 = vmatmul.mubr.bf16.vlgmr.msra.gmra.mxu0 %v93_v17  ;;  %755 = vmatpush3.bf16.msra.mxu1 %v843_v31 }
  0x56   :  { %756 = vmatprep.subr.bf16.mxu1 %v844_v32 }
  0x59   :  { %757 = vmatpush3.bf16.msra.mxu1 %v845_v33 }
 0x115   :  { %v236_v41 = vpop.f32.mrf.mxu0 }
 0x116   :  { %v1062_v42 = vadd.f32 %v236_v41, %v115_v39 }
 0x117   :  { %v238_v43 = vpop.f32.mrf.mxu0 }
 0x118   :  { %v245_v44 = vrot.slane %v1062_v42, 4  ;;  %v257_v45 = vmul.f32 %v1062_v42, %v1062_v42  ;;  %v239_v46 = vadd.f32 %v238_v43, %v119_v40 }
 0x119   :  { %v240_v47 = vpop.f32.mrf.mxu0 }
 0x11a   :  { %v246_v48 = vadd.f32 %v245_v44, %v1062_v42  ;;  %v259_v49 = vrot.slane %v257_v45, 4  ;;  %v251_v50 = vrot.slane %v239_v46, 4  ;;  %v258_v51 = vmul.f32 %v239_v46, %v239_v46 }
 0x11b   :  { %v241_v52 = vpop.f32.mrf.mxu0 }
 0x11c   :  { %v247_v53 = vrot.slane %v246_v48, 2  ;;  %v260_v54 = vadd.f32 %v259_v49, %v257_v45  ;;  %v252_v55 = vadd.f32 %v251_v50, %v239_v46  ;;  %v265_v56 = vrot.slane %v258_v51, 4 }
 0x11e   :  { %v248_v57 = vadd.f32 %v247_v53, %v246_v48  ;;  %v261_v58 = vrot.slane %v260_v54, 2  ;;  %v253_v59 = vrot.slane %v252_v55, 2  ;;  %v266_v60 = vadd.f32 %v265_v56, %v258_v51 }
 0x11f   :  { %v978_v56 = vmov 0.0  }
 0x120   :  { %v249_v61 = vrot.slane %v248_v57, 1  ;;  %v262_v62 = vadd.f32 %v261_v58, %v260_v54  ;;  %v254_v63 = vadd.f32 %v253_v59, %v252_v55  ;;  %v267_v0 = vrot.slane %v266_v60, 2  ;;  %v846_v55 = vld [vmem:[#allocation8 + $0x38] sm:$0xff]   ;;  %773 = vmatprep.subr.bf16.mxu0 %v978_v56  ;;  %789 = vmatprep.mubr.msk.bf16.mxu0 %vm979_vm0, %v978_v56  ;;  %v851_v58 = vld [vmem:[#allocation8 + $0x10] sm:$0xff]   ;;  %v852_v59 = vld [vmem:[#allocation8 + $0x8] sm:$0xff]  }
 0x121   :  { %774 = vmatpush3.bf16.msra.mxu0 %v846_v55 }
 0x122   :  { %v250_v1 = vadd.f32 %v249_v61, %v248_v57  ;;  %v263_v2 = vrot.slane %v262_v62, 1  ;;  %v268_v3 = vadd.f32 %v267_v0, %v266_v60  ;;  %v255_v4 = vrot.slane %v254_v63, 1  ;;  %775 = vmatprep.subr.bf16.mxu0 %v978_v56  ;;  %v850_v57 = vld [vmem:[#allocation8 + $0x18] sm:$0xff]   ;;  %v853_v60 = vld [vmem:[#allocation8] sm:$0xff]  }
 0x124   :  { %v264_v5 = vadd.f32 %v263_v2, %v262_v62  ;;  %v269_v6 = vrot.slane %v268_v3, 1  ;;  %v256_v7 = vadd.f32 %v255_v4, %v254_v63  ;;  %v271_v8 = vmul.f32 0.125, %v250_v1  ;;  %v716_v62 = vld [vmem:[%s1102_s6] ss:$0 sm:$0xff] }
 0x126   :  { %v273_v9 = vmul.f32 0.125, %v264_v5  ;;  %v270_v10 = vadd.f32 %v269_v6, %v268_v3  ;;  %v272_v11 = vmul.f32 0.125, %v256_v7  ;;  %v275_v12 = vmul.f32 %v271_v8, %v271_v8 }
 0x128   :  { %v274_v13 = vmul.f32 0.125, %v270_v10  ;;  %v276_v14 = vmul.f32 %v272_v11, %v272_v11  ;;  %v277_v15 = vsub.f32 %v273_v9, %v275_v12 }
 0x12a   :  { %v278_v16 = vsub.f32 %v274_v13, %v276_v14  ;;  %v279_v17 = vmax.f32 %v277_v15, 0.0 }
 0x12c   :  { %v280_v18 = vmax.f32 %v278_v16, 0.0  ;;  %v281_v19 = vadd.f32 1e-05, %v279_v17 }
 0x12e   :  { %v282_v20 = vadd.f32 1e-05, %v280_v18  ;;  %854 = vrsqrt.f32 %v281_v19 }
 0x130   :  { %856 = vrsqrt.f32 %v282_v20 }
 0x13b   :  { %v855_v24 = vpop.eup %854 }
 0x13d   :  { %v857_v26 = vpop.eup %856 }
 0x13e   :  { %v287_v27 = vcombine.low %v855_v24, %v857_v26  ;;  %v531_v26 = vld [vmem:[%s1104_s8] sm:$0x1]  ;;  %s940_s8 = scalar_lea.vmem %s690_s28, 128 }
 0x13f   :  { %p941_p6 = scmp.ne.s32.totalorder %s690_s28, %s940_s8  ;;  %p946_p8 = scmp.lt.s32.totalorder %s940_s8, %s940_s8 }
 0x140   :  { %v294_v28 = vrot.slane %v287_v27, %v293_v25 }
 0x141   :  { %p947_p9 = por %p946_p8, %p945_p7 }
 0x142   :  { %v301_v30 = vrot.slane %v294_v28, %v293_v25 }
 0x143   :  { %p948_p10 = pnand %p947_p9, %p941_p6 }
 0x144   :  { %v303_v31 = vmul.f32 %v301_v30, %v243_v29 }
 0x146   :  { %v308_v32 = vrot.slane %v303_v31, %v1053_v36  ;;  %v312_v33 = vrot.slane %v303_v31, %v1058_v38 }
 0x148   :  { %v315_v34 = vmul.f32 %v308_v32, %v271_v8  ;;  %v316_v37 = vmul.f32 %v312_v33, %v272_v11  ;;  %v337_v44 = vmul.f32 %v312_v33, %v239_v46  ;;  %v336_v47 = vmul.f32 %v308_v32, %v1062_v42  ;;  %v847_v46 = vld [vmem:[#allocation8 + $0x30] sm:$0xff]   ;;  %v849_v42 = vld [vmem:[#allocation8 + $0x20] sm:$0xff]  }
 0x149   :  { %776 = vmatpush3.bf16.msra.mxu0 %v847_v46 }
 0x14a   :  { %v319_v39 = vcombine.low %v315_v34, %v316_v37  ;;  %777 = vmatprep.subr.bf16.mxu0 %v978_v56  ;;  %v733_v37 = vld [vmem:[%s1106_s10] ss:$0 sm:$0xff] }
 0x14c   :  { %v326_v40 = vrot.slane %v319_v39, %v293_v25 }
 0x14e   :  { %v333_v41 = vrot.slane %v326_v40, %v293_v25 }
 0x150   :  { %v335_v43 = vsub.f32 %v244_v35, %v333_v41 }
 0x152   :  { %v346_v45 = vrot.slane %v335_v43, %v1058_v38  ;;  %v342_v48 = vrot.slane %v335_v43, %v1053_v36  ;;  %v848_v38 = vld [vmem:[#allocation8 + $0x28] sm:$0xff]  }
 0x153   :  { %778 = vmatpush3.bf16.msra.mxu0 %v848_v38 }
 0x154   :  { %v350_v49 = vadd.f32 %v346_v45, %v337_v44  ;;  %v349_v50 = vadd.f32 %v342_v48, %v336_v47  ;;  %779 = vmatprep.subr.bf16.mxu0 %v978_v56 }
 0x156   :  { %v352_v51 = vmax.f32 %v350_v49, 0.0  ;;  %v351_v52 = vmax.f32 %v349_v50, 0.0 }
 0x157   :  { %780 = vmatpush3.bf16.msra.mxu0 %v849_v42 }
 0x158   :  { %v354_v53 = vpack.c.bf16 %v352_v51, %v352_v51  ;;  %v353_v54 = vpack.c.bf16 %v351_v52, %v351_v52  ;;  %781 = vmatprep.subr.bf16.mxu0 %v978_v56 }
 0x15a   :  { %522 = vmatprep.mubr.bf16.mxu1 %v354_v53 }
 0x15b   :  { %523 = vmatmul.mubr.bf16.vlgmr.msra.gmra.mxu1 %v353_v54  ;;  %782 = vmatpush3.bf16.msra.mxu0 %v850_v57 }
 0x15c   :  { %783 = vmatprep.subr.bf16.mxu0 %v978_v56 }
 0x15f   :  { %784 = vmatpush3.bf16.msra.mxu0 %v851_v58 }
 0x160   :  { %785 = vmatprep.subr.bf16.mxu0 %v978_v56 }
 0x163   :  { %786 = vmatpush3.bf16.msra.mxu0 %v852_v59 }
 0x164   :  { %787 = vmatprep.subr.bf16.mxu0 %v978_v56 }
 0x167   :  { %788 = vmatpush3.bf16.msra.mxu0 %v853_v60 }
 0x21b   :  { %v758_v61 = vpop.f32.mrf.mxu1 }
 0x21d   :  { %v759_v63 = vpop.f32.mrf.mxu1 }
 0x21e   :  { %v760_v0 = vadd.f32 %v759_v63, %v758_v61 }
 0x21f   :  { %v761_v1 = vpop.f32.mrf.mxu1 }
 0x220   :  { %v525_v2 = vadd.f32 %v760_v0, %v716_v62 }
 0x221   :  { %v762_v3 = vpop.f32.mrf.mxu1 }
 0x222   :  { %v532_v4 = vrot.slane %v525_v2, 4  ;;  %v538_v5 = vmul.f32 %v525_v2, %v525_v2 }
 0x224   :  { %v533_v6 = vadd.f32 %v532_v4, %v525_v2  ;;  %v539_v7 = vrot.slane %v538_v5, 4 }
 0x226   :  { %v534_v8 = vrot.slane %v533_v6, 2  ;;  %v540_v9 = vadd.f32 %v539_v7, %v538_v5 }
 0x228   :  { %v535_v10 = vadd.f32 %v534_v8, %v533_v6  ;;  %v541_v11 = vrot.slane %v540_v9, 2 }
 0x22a   :  { %v536_v12 = vrot.slane %v535_v10, 1  ;;  %v542_v13 = vadd.f32 %v541_v11, %v540_v9 }
 0x22c   :  { %v537_v14 = vadd.f32 %v536_v12, %v535_v10  ;;  %v543_v15 = vrot.slane %v542_v13, 1 }
 0x22e   :  { %v544_v16 = vadd.f32 %v543_v15, %v542_v13  ;;  %v545_v17 = vmul.f32 0.125, %v537_v14 }
 0x230   :  { %v546_v18 = vmul.f32 0.125, %v544_v16  ;;  %v547_v19 = vmul.f32 %v545_v17, %v545_v17 }
 0x232   :  { %v548_v20 = vsub.f32 %v546_v18, %v547_v19 }
 0x234   :  { %v549_v21 = vmax.f32 %v548_v20, 0.0 }
 0x236   :  { %v550_v22 = vadd.f32 1e-05, %v549_v21 }
 0x238   :  { %858 = vrsqrt.f32 %v550_v22 }
 0x245   :  { %v859_v24 = vpop.eup %858 }
 0x246   :  { %v552_v25 = vmul.f32 %v859_v24, %v530_v23 }
 0x248   :  { %v553_v27 = vmul.f32 %v552_v25, %v545_v17  ;;  %v559_v28 = vrot.slane %v552_v25, %v1053_v36 }
 0x24a   :  { %v554_v29 = vsub.f32 %v531_v26, %v553_v27  ;;  %v561_v30 = vmul.f32 %v559_v28, %v525_v2 }
 0x24c   :  { %v566_v31 = vrot.slane %v554_v29, %v1053_v36 }
 0x24e   :  { %v568_v32 = vadd.f32 %v566_v31, %v561_v30 }
 0x250   :  { %v569_v33 = vmax.f32 %v568_v32, 0.0 }
 0x252   :  { %v570_v34 = vpack.c.bf16 %v569_v33, %v569_v33 }
 0x254   :  { %790 = vmatmul.mubr.bf16.vlgmr.msra.gmra.mxu0 %v570_v34 }
 0x314   :  { %v676_v39 = vpop.f32.mrf.mxu0 }
 0x315   :  { %v677_v40 = vadd.f32 %v733_v37, %v676_v39 }
 0x316   :  { %v791_v35 = vpop.f32.mrf.mxu0 }
 0x317   :  { %682 = vst [vmem:[#allocation10] sm:$0xff] %v677_v40 }
 0x318   :  { %v679_v41 = vpop.f32.mrf.mxu0 }
 0x319   :  { %951 = shalt.err (!%p948_p10)
}
 0x31a   :  { %692 = dma.vmem_to_hbm [thread:$0]  %s690_s28, 128, %s1107_s11, [#allocation4]   ;;  %v792_v36 = vpop.f32.mrf.mxu0 }
 0x31b   :  { %966 = dma.done.wait [#allocation4], 128  }
 0x31c   :  { %967 = vsyncadd [#allocation4], 4294967168 }
 0x31d   :  { %696 = vsyncpa [#allocation3], 1 }
 0x31e   :  { %697 = vsyncpa [#allocation6], 1 }
 0x31f   :  { %698 = vsyncpa [#allocation9], 1 }
 0x320   :  { %699 = vsyncpa [#allocation4], 1 }

</bundles_post_ra>
